<compile_context>
chip_gen: v7x
topology: tpu7x:2x2x1
jax: 0.10.0
libtpu: 0.0.40
codegen_flags: <defaults>
</compile_context>

<pallas_src>
import functools

import jax
import jax.numpy as jnp
import numpy as np
from jax.experimental import pallas as pl
from jax.experimental.pallas import tpu as pltpu


def _fused_kernel(x_ref, w1_ref, b1_ref, w2u_ref, b2_ref, mask_ref, o_ref,
                  xpad_ref, y1pad_ref, p1_ref, p2_ref, *,
                  b_imgs, h, w, pad, pad2, taps1, taps2, neg_slope):
    """Fused pad -> conv1 -> leaky_relu -> nearest-2x upsample -> conv2.

    Layout: channels on sublanes, flattened spatial (H*W) on lanes; B images
    are lane-concatenated in the patch matrices so each matmul covers B*H*W.
      x_ref    : (B, Cin, H*W)
      w1_ref   : (Cout, K*K*Cin)        rows (kh, kw, cin), MXU dtype
      b1_ref   : (Cout, 1)              f32
      w2u_ref  : (4*Cout, U*Cout)       merged polyphase weights, MXU dtype
      b2_ref   : (4*Cout, 1)            f32 (conv2 bias tiled per phase)
      mask_ref : (2*pad+1, H*W)         0/1 column-validity masks per dx shift
      o_ref    : (B, 4*Cout, H*W)       rows (ay, ax, cout), lane-dense output
      xpad_ref : (Cin, L1)   VMEM f32   row-flattened padded input
      y1pad_ref: (Cout, L2)  VMEM f32   row-flattened padded conv1 output
      p1_ref   : (K*K*Cin, B*H*W) VMEM  conv1 im2col patches (MXU dtype)
      p2_ref   : (U*Cout,  B*H*W) VMEM  conv2 union-tap patches (MXU dtype)
    """
    hw = h * w
    cin = x_ref.shape[1]
    cout = y1pad_ref.shape[0]

    # ---- zero ONLY the pad edges; interior is fully overwritten per image --
    def zero_edges(dst_ref, p):
        off = p * (w + 1)
        if off > 0:
            c, l = dst_ref.shape
            dst_ref[:, :off] = jnp.zeros((c, off), dst_ref.dtype)
            dst_ref[:, off + hw:] = jnp.zeros((c, l - off - hw), dst_ref.dtype)

    zero_edges(xpad_ref, pad)
    zero_edges(y1pad_ref, pad2)

    # ---- per-dx masks broadcast to channel height ONCE per conv ------------
    def build_masks(taps, p_this, c):
        out = {}
        for (_, tw) in taps:
            dx = tw - p_this
            if dx != 0 and dx not in out:
                out[dx] = jnp.broadcast_to(
                    mask_ref[dx + pad:dx + pad + 1, :], (c, hw))
        return out

    masks1 = build_masks(taps1, pad, cin)
    masks2 = build_masks(taps2, pad2, cout)

    def im2col(src_ref, dst_ref, taps, p_this, c, masks, lane_off):
        # dst rows [i*c,(i+1)*c), lanes [lane_off, lane_off+hw) <- tap i as a
        # constant lane-shifted slice of the flat padded buffer + column mask.
        for i, (th, tw) in enumerate(taps):
            d = th * w + tw
            sl = src_ref[:, d:d + hw]
            dx = tw - p_this
            if dx != 0:
                sl = sl * masks[dx]                       # f32 VPU math
            dst_ref[i * c:(i + 1) * c,
                    lane_off:lane_off + hw] = sl.astype(dst_ref.dtype)

    # ---- conv1: B im2col passes -> ONE MXU matmul over all images ----------
    off1 = pad * (w + 1)
    for b in range(b_imgs):
        xpad_ref[:, off1:off1 + hw] = x_ref[b].astype(xpad_ref.dtype)
        im2col(xpad_ref, p1_ref, taps1, pad, cin, masks1, b * hw)
    y1 = jnp.dot(w1_ref[...], p1_ref[...],
                 preferred_element_type=jnp.float32) + b1_ref[...]
    y1 = jnp.where(y1 >= 0.0, y1, neg_slope * y1)          # f32 leaky ReLU

    # ---- nearest-2x upsample + conv2: merged polyphase matmul --------------
    # One union-tap im2col is shared by all 4 output phases; the stacked
    # effective-weight matrix (zeros where a phase skips a tap) produces all
    # phases in a single (4*Cout, B*hw) matmul.  The 4x-sized upsampled
    # tensor is never materialized.
    off2 = pad2 * (w + 1)
    for b in range(b_imgs):
        y1pad_ref[:, off2:off2 + hw] = y1[:, b * hw:(b + 1) * hw]
        im2col(y1pad_ref, p2_ref, taps2, pad2, cout, masks2, b * hw)
    out_all = jnp.dot(w2u_ref[...], p2_ref[...],
                      preferred_element_type=jnp.float32) + b2_ref[...]

    for b in range(b_imgs):
        o_ref[b] = out_all[:, b * hw:(b + 1) * hw].astype(o_ref.dtype)


def _polyphase_union_weights(w2_oihw, padding):
    """Merged polyphase conv2 weights for nearest-2x upsample + conv.

    Returns:
      w2u        : (4*Cout, U*Cin2) stacked effective weights; rows ordered
                   (ay, ax, cout), cols ordered (dy, dx, cin); zero where a
                   phase does not use a union tap.
      union_taps : tuple of (dy+pad2, dx+pad2) shifts into the pad2-padded
                   conv1 output, covering ALL 4 phases.
      pad2       : padding needed on the conv1 output.
    """
    cout, cin2, k, _ = w2_oihw.shape
    pad2 = -(-padding // 2)                       # ceil(padding / 2)
    dvals = sorted({(a + kk - padding) // 2 for a in (0, 1) for kk in range(k)})
    nd = len(dvals)
    w2f = w2_oihw.astype(jnp.float32)
    w_eff = jnp.zeros((2, 2, cout, nd, nd, cin2), jnp.float32)
    for ay in (0, 1):
        for ax in (0, 1):
            for kh in range(k):
                i = dvals.index((ay + kh - padding) // 2)
                for kw in range(k):
                    j = dvals.index((ax + kw - padding) // 2)
                    w_eff = w_eff.at[ay, ax, :, i, j, :].add(w2f[:, :, kh, kw])
    w2u = w_eff.reshape(4 * cout, nd * nd * cin2)
    union_taps = tuple((dy + pad2, dx + pad2) for dy in dvals for dx in dvals)
    return w2u, union_taps, pad2


def upscale_double_conv_forward(img_nchw, params, padding, output_size=None, *,
                                images_per_step=None, mxu_dtype=jnp.bfloat16,
                                neg_slope=0.01):
    """Pallas implementation of UpscaleDoubleConv.forward (NCHW in / NCHW out).

    Like the PyTorch module, `output_size` is accepted but unused
    (interpolate uses scale_factor=2, mode='nearest').
    """
    del output_size
    n, cin, h, w = img_nchw.shape
    cout, _, k, _ = params["w1_oihw"].shape
    if k != 2 * padding + 1:
        # TODO(synk): only the size-preserving configuration (k == 2*padding+1,
        # how this UNet block is instantiated) is implemented in the fused
        # flat-row layout; other (k, padding) change spatial size per stage.
        raise NotImplementedError("fused kernel requires k == 2*padding + 1")

    hw = h * w
    dtype = img_nchw.dtype

    # bf16 MXU operands need even channel counts for sublane-pair-aligned
    # patch-row stores; otherwise fall back to f32 operands (still correct).
    if cin % 2 or cout % 2:
        mxu_dtype = jnp.float32

    # Images per grid step: amortize per-step overhead while keeping the grid
    # a multiple of 2 when possible (v7x shards "parallel" over 2 TensorCores).
    if images_per_step is None:
        images_per_step = 1
        for cand in (8, 4, 2):
            if n % cand == 0 and n // cand >= 2:
                images_per_step = cand
                break
    if n % images_per_step != 0:
        images_per_step = 1
    b_imgs = images_per_step
    grid = (n // b_imgs,)

    # conv1 weights -> (Cout, K*K*Cin), row order (kh, kw, cin)
    w1_mat = jnp.transpose(params["w1_oihw"], (0, 2, 3, 1)).reshape(
        cout, k * k * cin).astype(mxu_dtype)
    b1 = params["b1"].reshape(cout, 1).astype(jnp.float32)
    w2u, taps2, pad2 = _polyphase_union_weights(params["w2_oihw"], padding)
    u = len(taps2)
    w2u = w2u.astype(mxu_dtype)
    b2 = jnp.tile(params["b2"].reshape(cout, 1).astype(jnp.float32), (4, 1))

    taps1 = tuple((kh, kw) for kh in range(k) for kw in range(k))

    # 0/1 column-validity masks for horizontal tap shifts dx in [-pad, pad]
    cols = np.arange(hw) % w
    mask = jnp.asarray(np.stack(
        [((cols + dx >= 0) & (cols + dx < w)).astype(np.float32)
         for dx in range(-padding, padding + 1)], axis=0))

    l1 = (h + 2 * padding) * w + 2 * padding
    l2 = (h + 2 * pad2) * w + 2 * pad2

    kernel = functools.partial(
        _fused_kernel, b_imgs=b_imgs, h=h, w=w, pad=padding, pad2=pad2,
        taps1=taps1, taps2=taps2, neg_slope=neg_slope)

    # ---- explicit VMEM budget: scratch + ~double-buffered blocks + slack ----
    def nbytes(shape, dt):
        return int(np.prod(shape)) * np.dtype(dt).itemsize

    scratch_bytes = (nbytes((cin, l1), jnp.float32)
                     + nbytes((cout, l2), jnp.float32)
                     + nbytes((k * k * cin, b_imgs * hw), mxu_dtype)
                     + nbytes((u * cout, b_imgs * hw), mxu_dtype))
    block_bytes = (nbytes((b_imgs, cin, hw), dtype)
                   + nbytes((b_imgs, 4 * cout, hw), dtype)
                   + nbytes(w1_mat.shape, mxu_dtype)
                   + nbytes(w2u.shape, mxu_dtype)
                   + nbytes(b1.shape, jnp.float32)
                   + nbytes(b2.shape, jnp.float32)
                   + nbytes(mask.shape, jnp.float32))
    vmem_limit = int(min(max(scratch_bytes + 2 * block_bytes + (8 << 20),
                             32 << 20), 64 << 20))
    # TODO(synk): for real UNet channel/spatial sizes add a row-strip grid axis
    # (with +/-pad halo rows via the input index_map) so the im2col scratch
    # scales with the strip and fits v7x's 64 MiB VMEM.

    flops = int(2 * n * hw * cout * (k * k * cin + 4 * u * cout))
    bytes_accessed = int(nbytes((n, cin, hw), dtype)
                         + nbytes((n, 4 * cout, hw), dtype)
                         + nbytes(w1_mat.shape, mxu_dtype)
                         + nbytes(w2u.shape, mxu_dtype)
                         + nbytes(b1.shape, jnp.float32)
                         + nbytes(b2.shape, jnp.float32)
                         + nbytes(mask.shape, jnp.float32))

    out = pl.pallas_call(
        kernel,
        out_shape=jax.ShapeDtypeStruct((n, 4 * cout, hw), dtype),
        grid=grid,
        in_specs=[
            pl.BlockSpec((b_imgs, cin, hw), lambda i: (i, 0, 0)),
            # Grid-invariant blocks below stay resident in VMEM across grid.
            pl.BlockSpec((cout, k * k * cin), lambda i: (0, 0)),
            pl.BlockSpec((cout, 1), lambda i: (0, 0)),
            pl.BlockSpec((4 * cout, u * cout), lambda i: (0, 0)),
            pl.BlockSpec((4 * cout, 1), lambda i: (0, 0)),
            pl.BlockSpec((2 * padding + 1, hw), lambda i: (0, 0)),
        ],
        out_specs=pl.BlockSpec((b_imgs, 4 * cout, hw), lambda i: (i, 0, 0)),
        scratch_shapes=[
            pltpu.VMEM((cin, l1), jnp.float32),                 # padded input
            pltpu.VMEM((cout, l2), jnp.float32),                # padded conv1
            pltpu.VMEM((k * k * cin, b_imgs * hw), mxu_dtype),  # conv1 im2col
            pltpu.VMEM((u * cout, b_imgs * hw), mxu_dtype),     # conv2 im2col
        ],
        compiler_params=pltpu.CompilerParams(
            dimension_semantics=("parallel",),
            vmem_limit_bytes=vmem_limit),
        cost_estimate=pl.CostEstimate(flops=flops, transcendentals=0,
                                      bytes_accessed=bytes_accessed),
    )(img_nchw.reshape(n, cin, hw), w1_mat, b1, w2u, b2, mask)

    # (N, (ay,ax,C), H*W) -> (N, C, 2H, 2W).  Phase de-interleave left to XLA.
    # TODO(synk): removable by an in-kernel XLU lane interleave of the two ax
    # phases (emit (N,2,C,H,2W)) or by downstream accepting phase-major layout.
    out = out.reshape(n, 2, 2, cout, h, w)
    out = jnp.transpose(out, (0, 3, 4, 1, 5, 2))
    return out.reshape(n, cout, 2 * h, 2 * w)


def init_params(key, cin, cout, k):
    """Deterministic kaiming-uniform-like init (matches the module's shapes)."""
    k1, k2, k3, k4 = jax.random.split(key, 4)

    def kaiming_uniform(rng, co, ci, kk):
        bound = float(np.sqrt(6.0 / (ci * kk * kk)))
        return jax.random.uniform(rng, (co, ci, kk, kk), jnp.float32,
                                  -bound, bound)

    return dict(
        w1_oihw=kaiming_uniform(k1, cout, cin, k),
        b1=jax.random.uniform(k2, (cout,), jnp.float32, -0.1, 0.1),
        w2_oihw=kaiming_uniform(k3, cout, cout, k),
        b2=jax.random.uniform(k4, (cout,), jnp.float32, -0.1, 0.1),
    )


def reference_forward(img_nchw, params, padding):
    """Pure-JAX (XLA) reference mirroring the PyTorch forward, NCHW."""
    dn = jax.lax.conv_dimension_numbers(
        img_nchw.shape, params["w1_oihw"].shape, ("NCHW", "OIHW", "NCHW"))
    x = jax.lax.conv_general_dilated(
        img_nchw, params["w1_oihw"], (1, 1),
        [(padding, padding), (padding, padding)], dimension_numbers=dn)
    x = x + params["b1"][None, :, None, None]
    x = jnp.where(x >= 0, x, 0.01 * x)
    x = jnp.repeat(jnp.repeat(x, 2, axis=2), 2, axis=3)
    dn2 = jax.lax.conv_dimension_numbers(
        x.shape, params["w2_oihw"].shape, ("NCHW", "OIHW", "NCHW"))
    x = jax.lax.conv_general_dilated(
        x, params["w2_oihw"], (1, 1),
        [(padding, padding), (padding, padding)], dimension_numbers=dn2)
    return x + params["b2"][None, :, None, None]


if __name__ == "__main__":
    N, CIN, COUT, K, PAD, H, W = 2, 4, 8, 3, 1, 16, 16

    key = jax.random.PRNGKey(0)
    k_img, k_par = jax.random.split(key)
    img = jax.random.normal(k_img, (N, CIN, H, W), jnp.float32)   # NCHW
    params = init_params(k_par, CIN, COUT, K)

    ref = jax.block_until_ready(reference_forward(img, params, padding=PAD))

    # f32 MXU operands: validates the fused/merged kernel logic tightly.
    fwd_f32 = jax.jit(functools.partial(upscale_double_conv_forward,
                                        padding=PAD, mxu_dtype=jnp.float32))
    out_f32 = jax.block_until_ready(fwd_f32(img, params))
    assert out_f32.shape == ref.shape == (N, COUT, 2 * H, 2 * W)
    np.testing.assert_allclose(np.asarray(out_f32), np.asarray(ref),
                               rtol=1e-3, atol=1e-3)

    # Default path: bf16 MXU operands + f32 accumulation / f32 VPU math.
    # Looser tolerance reflects bf16 operand rounding only.
    fwd = jax.jit(functools.partial(upscale_double_conv_forward, padding=PAD))
    out = jax.block_until_ready(fwd(img, params))
    assert out.shape == ref.shape
    np.testing.assert_allclose(np.asarray(out), np.asarray(ref),
                               rtol=5e-2, atol=1e-1)

    print("KERNEL_OK")
</pallas_src>

<mosaic_0001>
module attributes {stable_mosaic.version = 11 : i64} {
  func.func @_fused_kernel(%arg0: i32, %arg1: memref<1x4x256xf32, #tpu.memory_space<vmem>>, %arg2: memref<8x36xf32, #tpu.memory_space<vmem>>, %arg3: memref<8x1xf32, #tpu.memory_space<vmem>>, %arg4: memref<32x72xf32, #tpu.memory_space<vmem>>, %arg5: memref<32x1xf32, #tpu.memory_space<vmem>>, %arg6: memref<3x256xf32, #tpu.memory_space<vmem>>, %arg7: memref<1x32x256xf32, #tpu.memory_space<vmem>>, %arg8: memref<4x290xf32, #tpu.memory_space<vmem>>, %arg9: memref<8x290xf32, #tpu.memory_space<vmem>>, %arg10: memref<36x256xf32, #tpu.memory_space<vmem>>, %arg11: memref<72x256xf32, #tpu.memory_space<vmem>>) attributes {dimension_semantics = [#tpu.dimension_semantics<parallel>], iteration_bounds = array<i64: 2>, scalar_prefetch = 0 : i64, scratch_operands = 4 : i64, tpu.core_type = #tpu.core_type<tc>, window_params = [{transform_indices = @transform_0, window_bounds = array<i64: 1, 4, 256>}, {pipeline_mode = #tpu.pipeline_mode<synchronous>, transform_indices = @transform_1, window_bounds = array<i64: 8, 36>}, {pipeline_mode = #tpu.pipeline_mode<synchronous>, transform_indices = @transform_2, window_bounds = array<i64: 8, 1>}, {pipeline_mode = #tpu.pipeline_mode<synchronous>, transform_indices = @transform_3, window_bounds = array<i64: 32, 72>}, {pipeline_mode = #tpu.pipeline_mode<synchronous>, transform_indices = @transform_4, window_bounds = array<i64: 32, 1>}, {pipeline_mode = #tpu.pipeline_mode<synchronous>, transform_indices = @transform_5, window_bounds = array<i64: 3, 256>}, {transform_indices = @transform_6, window_bounds = array<i64: 1, 32, 256>}]} {
    %cst = arith.constant 0.000000e+00 : f32
    %0 = vector.broadcast %cst : f32 to vector<4x17xf32>
    %c0 = arith.constant 0 : index
    %c0_0 = arith.constant 0 : index
    %1 = vector.load %arg8[%c0, %c0_0] : memref<4x290xf32, #tpu.memory_space<vmem>>, vector<4x17xf32>
    tpu.vector_store %arg8[%c0, %c0_0], %0 {strides = array<i32>} : memref<4x290xf32, #tpu.memory_space<vmem>>, vector<4x17xf32>,
    %cst_1 = arith.constant 0.000000e+00 : f32
    %2 = vector.broadcast %cst_1 : f32 to vector<4x17xf32>
    %c0_2 = arith.constant 0 : index
    %c273 = arith.constant 273 : index
    %3 = vector.load %arg8[%c0_2, %c273] : memref<4x290xf32, #tpu.memory_space<vmem>>, vector<4x17xf32>
    tpu.vector_store %arg8[%c0_2, %c273], %2 {strides = array<i32>} : memref<4x290xf32, #tpu.memory_space<vmem>>, vector<4x17xf32>,
    %cst_3 = arith.constant 0.000000e+00 : f32
    %4 = vector.broadcast %cst_3 : f32 to vector<8x17xf32>
    %c0_4 = arith.constant 0 : index
    %c0_5 = arith.constant 0 : index
    %5 = vector.load %arg9[%c0_4, %c0_5] : memref<8x290xf32, #tpu.memory_space<vmem>>, vector<8x17xf32>
    tpu.vector_store %arg9[%c0_4, %c0_5], %4 {strides = array<i32>} : memref<8x290xf32, #tpu.memory_space<vmem>>, vector<8x17xf32>,
    %cst_6 = arith.constant 0.000000e+00 : f32
    %6 = vector.broadcast %cst_6 : f32 to vector<8x17xf32>
    %c0_7 = arith.constant 0 : index
    %c273_8 = arith.constant 273 : index
    %7 = vector.load %arg9[%c0_7, %c273_8] : memref<8x290xf32, #tpu.memory_space<vmem>>, vector<8x17xf32>
    tpu.vector_store %arg9[%c0_7, %c273_8], %6 {strides = array<i32>} : memref<8x290xf32, #tpu.memory_space<vmem>>, vector<8x17xf32>,
    %c0_9 = arith.constant 0 : index
    %c0_10 = arith.constant 0 : index
    %8 = vector.load %arg6[%c0_9, %c0_10] : memref<3x256xf32, #tpu.memory_space<vmem>>, vector<1x256xf32>
    %9 = vector.shape_cast %8 : vector<1x256xf32> to vector<1x256xf32>
    %10 = vector.broadcast %9 : vector<1x256xf32> to vector<4x256xf32>
    %c2 = arith.constant 2 : index
    %c0_11 = arith.constant 0 : index
    %11 = vector.load %arg6[%c2, %c0_11] : memref<3x256xf32, #tpu.memory_space<vmem>>, vector<1x256xf32>
    %12 = vector.shape_cast %11 : vector<1x256xf32> to vector<1x256xf32>
    %13 = vector.broadcast %12 : vector<1x256xf32> to vector<4x256xf32>
    %c0_12 = arith.constant 0 : index
    %c0_13 = arith.constant 0 : index
    %14 = vector.load %arg6[%c0_12, %c0_13] : memref<3x256xf32, #tpu.memory_space<vmem>>, vector<1x256xf32>
    %15 = vector.shape_cast %14 : vector<1x256xf32> to vector<1x256xf32>
    %16 = vector.broadcast %15 : vector<1x256xf32> to vector<8x256xf32>
    %c2_14 = arith.constant 2 : index
    %c0_15 = arith.constant 0 : index
    %17 = vector.load %arg6[%c2_14, %c0_15] : memref<3x256xf32, #tpu.memory_space<vmem>>, vector<1x256xf32>
    %18 = vector.shape_cast %17 : vector<1x256xf32> to vector<1x256xf32>
    %19 = vector.broadcast %18 : vector<1x256xf32> to vector<8x256xf32>
    %c0_16 = arith.constant 0 : index
    %c0_17 = arith.constant 0 : index
    %c0_18 = arith.constant 0 : index
    %20 = vector.load %arg1[%c0_16, %c0_17, %c0_18] : memref<1x4x256xf32, #tpu.memory_space<vmem>>, vector<1x4x256xf32>
    %21 = vector.shape_cast %20 : vector<1x4x256xf32> to vector<4x256xf32>
    %c0_19 = arith.constant 0 : index
    %c17 = arith.constant 17 : index
    %22 = vector.load %arg8[%c0_19, %c17] : memref<4x290xf32, #tpu.memory_space<vmem>>, vector<4x256xf32>
    tpu.vector_store %arg8[%c0_19, %c17], %21 {strides = array<i32>} : memref<4x290xf32, #tpu.memory_space<vmem>>, vector<4x256xf32>,
    %c0_20 = arith.constant 0 : index
    %c0_21 = arith.constant 0 : index
    %23 = vector.load %arg8[%c0_20, %c0_21] : memref<4x290xf32, #tpu.memory_space<vmem>>, vector<4x256xf32>
    %24 = arith.mulf %23, %10 : vector<4x256xf32>
    %c0_22 = arith.constant 0 : index
    %c0_23 = arith.constant 0 : index
    %25 = vector.load %arg10[%c0_22, %c0_23] : memref<36x256xf32, #tpu.memory_space<vmem>>, vector<4x256xf32>
    tpu.vector_store %arg10[%c0_22, %c0_23], %24 {strides = array<i32>} : memref<36x256xf32, #tpu.memory_space<vmem>>, vector<4x256xf32>,
    %c0_24 = arith.constant 0 : index
    %c1 = arith.constant 1 : index
    %26 = vector.load %arg8[%c0_24, %c1] : memref<4x290xf32, #tpu.memory_space<vmem>>, vector<4x256xf32>
    %c4 = arith.constant 4 : index
    %c0_25 = arith.constant 0 : index
    %27 = vector.load %arg10[%c4, %c0_25] : memref<36x256xf32, #tpu.memory_space<vmem>>, vector<4x256xf32>
    tpu.vector_store %arg10[%c4, %c0_25], %26 {strides = array<i32>} : memref<36x256xf32, #tpu.memory_space<vmem>>, vector<4x256xf32>,
    %c0_26 = arith.constant 0 : index
    %c2_27 = arith.constant 2 : index
    %28 = vector.load %arg8[%c0_26, %c2_27] : memref<4x290xf32, #tpu.memory_space<vmem>>, vector<4x256xf32>
    %29 = arith.mulf %28, %13 : vector<4x256xf32>
    %c8 = arith.constant 8 : index
    %c0_28 = arith.constant 0 : index
    %30 = vector.load %arg10[%c8, %c0_28] : memref<36x256xf32, #tpu.memory_space<vmem>>, vector<4x256xf32>
    tpu.vector_store %arg10[%c8, %c0_28], %29 {strides = array<i32>} : memref<36x256xf32, #tpu.memory_space<vmem>>, vector<4x256xf32>,
    %c0_29 = arith.constant 0 : index
    %c16 = arith.constant 16 : index
    %31 = vector.load %arg8[%c0_29, %c16] : memref<4x290xf32, #tpu.memory_space<vmem>>, vector<4x256xf32>
    %32 = arith.mulf %31, %10 : vector<4x256xf32>
    %c12 = arith.constant 12 : index
    %c0_30 = arith.constant 0 : index
    %33 = vector.load %arg10[%c12, %c0_30] : memref<36x256xf32, #tpu.memory_space<vmem>>, vector<4x256xf32>
    tpu.vector_store %arg10[%c12, %c0_30], %32 {strides = array<i32>} : memref<36x256xf32, #tpu.memory_space<vmem>>, vector<4x256xf32>,
    %c0_31 = arith.constant 0 : index
    %c17_32 = arith.constant 17 : index
    %34 = vector.load %arg8[%c0_31, %c17_32] : memref<4x290xf32, #tpu.memory_space<vmem>>, vector<4x256xf32>
    %c16_33 = arith.constant 16 : index
    %c0_34 = arith.constant 0 : index
    %35 = vector.load %arg10[%c16_33, %c0_34] : memref<36x256xf32, #tpu.memory_space<vmem>>, vector<4x256xf32>
    tpu.vector_store %arg10[%c16_33, %c0_34], %34 {strides = array<i32>} : memref<36x256xf32, #tpu.memory_space<vmem>>, vector<4x256xf32>,
    %c0_35 = arith.constant 0 : index
    %c18 = arith.constant 18 : index
    %36 = vector.load %arg8[%c0_35, %c18] : memref<4x290xf32, #tpu.memory_space<vmem>>, vector<4x256xf32>
    %37 = arith.mulf %36, %13 : vector<4x256xf32>
    %c20 = arith.constant 20 : index
    %c0_36 = arith.constant 0 : index
    %38 = vector.load %arg10[%c20, %c0_36] : memref<36x256xf32, #tpu.memory_space<vmem>>, vector<4x256xf32>
    tpu.vector_store %arg10[%c20, %c0_36], %37 {strides = array<i32>} : memref<36x256xf32, #tpu.memory_space<vmem>>, vector<4x256xf32>,
    %c0_37 = arith.constant 0 : index
    %c32 = arith.constant 32 : index
    %39 = vector.load %arg8[%c0_37, %c32] : memref<4x290xf32, #tpu.memory_space<vmem>>, vector<4x256xf32>
    %40 = arith.mulf %39, %10 : vector<4x256xf32>
    %c24 = arith.constant 24 : index
    %c0_38 = arith.constant 0 : index
    %41 = vector.load %arg10[%c24, %c0_38] : memref<36x256xf32, #tpu.memory_space<vmem>>, vector<4x256xf32>
    tpu.vector_store %arg10[%c24, %c0_38], %40 {strides = array<i32>} : memref<36x256xf32, #tpu.memory_space<vmem>>, vector<4x256xf32>,
    %c0_39 = arith.constant 0 : index
    %c33 = arith.constant 33 : index
    %42 = vector.load %arg8[%c0_39, %c33] : memref<4x290xf32, #tpu.memory_space<vmem>>, vector<4x256xf32>
    %c28 = arith.constant 28 : index
    %c0_40 = arith.constant 0 : index
    %43 = vector.load %arg10[%c28, %c0_40] : memref<36x256xf32, #tpu.memory_space<vmem>>, vector<4x256xf32>
    tpu.vector_store %arg10[%c28, %c0_40], %42 {strides = array<i32>} : memref<36x256xf32, #tpu.memory_space<vmem>>, vector<4x256xf32>,
    %c0_41 = arith.constant 0 : index
    %c34 = arith.constant 34 : index
    %44 = vector.load %arg8[%c0_41, %c34] : memref<4x290xf32, #tpu.memory_space<vmem>>, vector<4x256xf32>
    %45 = arith.mulf %44, %13 : vector<4x256xf32>
    %c32_42 = arith.constant 32 : index
    %c0_43 = arith.constant 0 : index
    %46 = vector.load %arg10[%c32_42, %c0_43] : memref<36x256xf32, #tpu.memory_space<vmem>>, vector<4x256xf32>
    tpu.vector_store %arg10[%c32_42, %c0_43], %45 {strides = array<i32>} : memref<36x256xf32, #tpu.memory_space<vmem>>, vector<4x256xf32>,
    %c0_44 = arith.constant 0 : index
    %c0_45 = arith.constant 0 : index
    %47 = vector.load %arg2[%c0_44, %c0_45] : memref<8x36xf32, #tpu.memory_space<vmem>>, vector<8x36xf32>
    %c0_46 = arith.constant 0 : index
    %c0_47 = arith.constant 0 : index
    %48 = vector.load %arg10[%c0_46, %c0_47] : memref<36x256xf32, #tpu.memory_space<vmem>>, vector<36x256xf32>
    %cst_48 = arith.constant dense<0.000000e+00> : vector<8x256xf32>
    %49 = tpu.matmul %47, %48, %cst_48 {dimension_numbers = #tpu.dot_dimension_numbers<[1], [0], [0], [1], [0, 0, 1, 1], [], []>} : vector<8x36xf32>, vector<36x256xf32>, vector<8x256xf32> -> vector<8x256xf32>
    %c0_49 = arith.constant 0 : index
    %c0_50 = arith.constant 0 : index
    %50 = vector.load %arg3[%c0_49, %c0_50] : memref<8x1xf32, #tpu.memory_space<vmem>>, vector<8x1xf32>
    %51 = vector.broadcast %50 : vector<8x1xf32> to vector<8x256xf32>
    %52 = arith.addf %49, %51 : vector<8x256xf32>
    %cst_51 = arith.constant 0.000000e+00 : f32
    %53 = vector.broadcast %cst_51 : f32 to vector<8x256xf32>
    %54 = arith.cmpf oge, %52, %53 : vector<8x256xf32>
    %cst_52 = arith.constant 0.00999999977 : f32
    %55 = vector.broadcast %cst_52 : f32 to vector<8x256xf32>
    %56 = arith.mulf %55, %52 : vector<8x256xf32>
    %57 = arith.select %54, %52, %56 : vector<8x256xi1>, vector<8x256xf32>
    %c0_53 = arith.constant 0 : index
    %c17_54 = arith.constant 17 : index
    %58 = vector.load %arg9[%c0_53, %c17_54] : memref<8x290xf32, #tpu.memory_space<vmem>>, vector<8x256xf32>
    tpu.vector_store %arg9[%c0_53, %c17_54], %57 {strides = array<i32>} : memref<8x290xf32, #tpu.memory_space<vmem>>, vector<8x256xf32>,
    %c0_55 = arith.constant 0 : index
    %c0_56 = arith.constant 0 : index
    %59 = vector.load %arg9[%c0_55, %c0_56] : memref<8x290xf32, #tpu.memory_space<vmem>>, vector<8x256xf32>
    %60 = arith.mulf %59, %16 : vector<8x256xf32>
    %c0_57 = arith.constant 0 : index
    %c0_58 = arith.constant 0 : index
    %61 = vector.load %arg11[%c0_57, %c0_58] : memref<72x256xf32, #tpu.memory_space<vmem>>, vector<8x256xf32>
    tpu.vector_store %arg11[%c0_57, %c0_58], %60 {strides = array<i32>} : memref<72x256xf32, #tpu.memory_space<vmem>>, vector<8x256xf32>,
    %c0_59 = arith.constant 0 : index
    %c1_60 = arith.constant 1 : index
    %62 = vector.load %arg9[%c0_59, %c1_60] : memref<8x290xf32, #tpu.memory_space<vmem>>, vector<8x256xf32>
    %c8_61 = arith.constant 8 : index
    %c0_62 = arith.constant 0 : index
    %63 = vector.load %arg11[%c8_61, %c0_62] : memref<72x256xf32, #tpu.memory_space<vmem>>, vector<8x256xf32>
    tpu.vector_store %arg11[%c8_61, %c0_62], %62 {strides = array<i32>} : memref<72x256xf32, #tpu.memory_space<vmem>>, vector<8x256xf32>,
    %c0_63 = arith.constant 0 : index
    %c2_64 = arith.constant 2 : index
    %64 = vector.load %arg9[%c0_63, %c2_64] : memref<8x290xf32, #tpu.memory_space<vmem>>, vector<8x256xf32>
    %65 = arith.mulf %64, %19 : vector<8x256xf32>
    %c16_65 = arith.constant 16 : index
    %c0_66 = arith.constant 0 : index
    %66 = vector.load %arg11[%c16_65, %c0_66] : memref<72x256xf32, #tpu.memory_space<vmem>>, vector<8x256xf32>
    tpu.vector_store %arg11[%c16_65, %c0_66], %65 {strides = array<i32>} : memref<72x256xf32, #tpu.memory_space<vmem>>, vector<8x256xf32>,
    %c0_67 = arith.constant 0 : index
    %c16_68 = arith.constant 16 : index
    %67 = vector.load %arg9[%c0_67, %c16_68] : memref<8x290xf32, #tpu.memory_space<vmem>>, vector<8x256xf32>
    %68 = arith.mulf %67, %16 : vector<8x256xf32>
    %c24_69 = arith.constant 24 : index
    %c0_70 = arith.constant 0 : index
    %69 = vector.load %arg11[%c24_69, %c0_70] : memref<72x256xf32, #tpu.memory_space<vmem>>, vector<8x256xf32>
    tpu.vector_store %arg11[%c24_69, %c0_70], %68 {strides = array<i32>} : memref<72x256xf32, #tpu.memory_space<vmem>>, vector<8x256xf32>,
    %c0_71 = arith.constant 0 : index
    %c17_72 = arith.constant 17 : index
    %70 = vector.load %arg9[%c0_71, %c17_72] : memref<8x290xf32, #tpu.memory_space<vmem>>, vector<8x256xf32>
    %c32_73 = arith.constant 32 : index
    %c0_74 = arith.constant 0 : index
    %71 = vector.load %arg11[%c32_73, %c0_74] : memref<72x256xf32, #tpu.memory_space<vmem>>, vector<8x256xf32>
    tpu.vector_store %arg11[%c32_73, %c0_74], %70 {strides = array<i32>} : memref<72x256xf32, #tpu.memory_space<vmem>>, vector<8x256xf32>,
    %c0_75 = arith.constant 0 : index
    %c18_76 = arith.constant 18 : index
    %72 = vector.load %arg9[%c0_75, %c18_76] : memref<8x290xf32, #tpu.memory_space<vmem>>, vector<8x256xf32>
    %73 = arith.mulf %72, %19 : vector<8x256xf32>
    %c40 = arith.constant 40 : index
    %c0_77 = arith.constant 0 : index
    %74 = vector.load %arg11[%c40, %c0_77] : memref<72x256xf32, #tpu.memory_space<vmem>>, vector<8x256xf32>
    tpu.vector_store %arg11[%c40, %c0_77], %73 {strides = array<i32>} : memref<72x256xf32, #tpu.memory_space<vmem>>, vector<8x256xf32>,
    %c0_78 = arith.constant 0 : index
    %c32_79 = arith.constant 32 : index
    %75 = vector.load %arg9[%c0_78, %c32_79] : memref<8x290xf32, #tpu.memory_space<vmem>>, vector<8x256xf32>
    %76 = arith.mulf %75, %16 : vector<8x256xf32>
    %c48 = arith.constant 48 : index
    %c0_80 = arith.constant 0 : index
    %77 = vector.load %arg11[%c48, %c0_80] : memref<72x256xf32, #tpu.memory_space<vmem>>, vector<8x256xf32>
    tpu.vector_store %arg11[%c48, %c0_80], %76 {strides = array<i32>} : memref<72x256xf32, #tpu.memory_space<vmem>>, vector<8x256xf32>,
    %c0_81 = arith.constant 0 : index
    %c33_82 = arith.constant 33 : index
    %78 = vector.load %arg9[%c0_81, %c33_82] : memref<8x290xf32, #tpu.memory_space<vmem>>, vector<8x256xf32>
    %c56 = arith.constant 56 : index
    %c0_83 = arith.constant 0 : index
    %79 = vector.load %arg11[%c56, %c0_83] : memref<72x256xf32, #tpu.memory_space<vmem>>, vector<8x256xf32>
    tpu.vector_store %arg11[%c56, %c0_83], %78 {strides = array<i32>} : memref<72x256xf32, #tpu.memory_space<vmem>>, vector<8x256xf32>,
    %c0_84 = arith.constant 0 : index
    %c34_85 = arith.constant 34 : index
    %80 = vector.load %arg9[%c0_84, %c34_85] : memref<8x290xf32, #tpu.memory_space<vmem>>, vector<8x256xf32>
    %81 = arith.mulf %80, %19 : vector<8x256xf32>
    %c64 = arith.constant 64 : index
    %c0_86 = arith.constant 0 : index
    %82 = vector.load %arg11[%c64, %c0_86] : memref<72x256xf32, #tpu.memory_space<vmem>>, vector<8x256xf32>
    tpu.vector_store %arg11[%c64, %c0_86], %81 {strides = array<i32>} : memref<72x256xf32, #tpu.memory_space<vmem>>, vector<8x256xf32>,
    %c0_87 = arith.constant 0 : index
    %c0_88 = arith.constant 0 : index
    %83 = vector.load %arg4[%c0_87, %c0_88] : memref<32x72xf32, #tpu.memory_space<vmem>>, vector<32x72xf32>
    %c0_89 = arith.constant 0 : index
    %c0_90 = arith.constant 0 : index
    %84 = vector.load %arg11[%c0_89, %c0_90] : memref<72x256xf32, #tpu.memory_space<vmem>>, vector<72x256xf32>
    %cst_91 = arith.constant dense<0.000000e+00> : vector<32x256xf32>
    %85 = tpu.matmul %83, %84, %cst_91 {dimension_numbers = #tpu.dot_dimension_numbers<[1], [0], [0], [1], [0, 0, 1, 1], [], []>} : vector<32x72xf32>, vector<72x256xf32>, vector<32x256xf32> -> vector<32x256xf32>
    %c0_92 = arith.constant 0 : index
    %c0_93 = arith.constant 0 : index
    %86 = vector.load %arg5[%c0_92, %c0_93] : memref<32x1xf32, #tpu.memory_space<vmem>>, vector<32x1xf32>
    %87 = vector.broadcast %86 : vector<32x1xf32> to vector<32x256xf32>
    %88 = arith.addf %85, %87 : vector<32x256xf32>
    %c0_94 = arith.constant 0 : index
    %c0_95 = arith.constant 0 : index
    %c0_96 = arith.constant 0 : index
    %89 = vector.load %arg7[%c0_94, %c0_95, %c0_96] : memref<1x32x256xf32, #tpu.memory_space<vmem>>, vector<1x32x256xf32>
    %90 = vector.shape_cast %89 : vector<1x32x256xf32> to vector<32x256xf32>
    %91 = vector.shape_cast %88 : vector<32x256xf32> to vector<1x32x256xf32>
    tpu.vector_store %arg7[%c0_94, %c0_95, %c0_96], %91 {strides = array<i32>} : memref<1x32x256xf32, #tpu.memory_space<vmem>>, vector<1x32x256xf32>,
    return
  }
  func.func @transform_0(%arg0: i32) -> (i32, i32, i32) {
    %c0_i32 = arith.constant 0 : i32
    %c0_i32_0 = arith.constant 0 : i32
    %c0_i32_1 = arith.constant 0 : i32
    return %arg0, %c0_i32, %c0_i32_0 : i32, i32, i32
  }
  func.func @transform_1(%arg0: i32) -> (i32, i32) {
    %c0_i32 = arith.constant 0 : i32
    %c0_i32_0 = arith.constant 0 : i32
    %c0_i32_1 = arith.constant 0 : i32
    return %c0_i32, %c0_i32_0 : i32, i32
  }
  func.func @transform_2(%arg0: i32) -> (i32, i32) {
    %c0_i32 = arith.constant 0 : i32
    %c0_i32_0 = arith.constant 0 : i32
    %c0_i32_1 = arith.constant 0 : i32
    return %c0_i32, %c0_i32_0 : i32, i32
  }
  func.func @transform_3(%arg0: i32) -> (i32, i32) {
    %c0_i32 = arith.constant 0 : i32
    %c0_i32_0 = arith.constant 0 : i32
    %c0_i32_1 = arith.constant 0 : i32
    return %c0_i32, %c0_i32_0 : i32, i32
  }
  func.func @transform_4(%arg0: i32) -> (i32, i32) {
    %c0_i32 = arith.constant 0 : i32
    %c0_i32_0 = arith.constant 0 : i32
    %c0_i32_1 = arith.constant 0 : i32
    return %c0_i32, %c0_i32_0 : i32, i32
  }
  func.func @transform_5(%arg0: i32) -> (i32, i32) {
    %c0_i32 = arith.constant 0 : i32
    %c0_i32_0 = arith.constant 0 : i32
    %c0_i32_1 = arith.constant 0 : i32
    return %c0_i32, %c0_i32_0 : i32, i32
  }
  func.func @transform_6(%arg0: i32) -> (i32, i32, i32) {
    %c0_i32 = arith.constant 0 : i32
    %c0_i32_0 = arith.constant 0 : i32
    %c0_i32_1 = arith.constant 0 : i32
    return %arg0, %c0_i32, %c0_i32_0 : i32, i32, i32
  }
}

</mosaic_0001>

<bundles_post_ra>
// kernel: upscale_double_conv_forward.1
= control target key start
LH: loop header
LB: loop body
LE: loop exit
PB: predicated region body
PF: predicated region fallthrough
CT: control target
= control target key end

     0   :  { %s1201_s21 = smov 0   ;;  %s1433_s0 = inlined_call_operand.vmem [shape: f32[2,4,256], index: 0, kind: input, shape index: {}]   ;;  %s1434_s1 = inlined_call_operand.vmem [shape: f32[8,36], index: 1, kind: input, shape index: {}]   ;;  %s1435_s2 = inlined_call_operand.vmem [shape: f32[8,1], index: 2, kind: input, shape index: {}]   ;;  %s1436_s3 = inlined_call_operand.vmem [shape: f32[32,72], index: 3, kind: input, shape index: {}]   ;;  %s1437_s4 = inlined_call_operand.vmem [shape: f32[32,1], index: 4, kind: input, shape index: {}]   ;;  %s1438_s5 = inlined_call_operand.vmem [shape: f32[3,256], index: 5, kind: input, shape index: {}]   ;;  %s1439_s6 = inlined_call_operand.vmem [shape: f32[2,32,256], index: 6, kind: output, shape index: {}]  }
   0x1 LB: > { %s1034_s22 = sadd.s32 4294967295, %s1148_s21   ;;  %p1038_p0 = scmp.ge.s32.totalorder %s1148_s21, 1  ;;  %s1148_s21 = sphi %s1201_s21, %s16_s21  }
   0x2   : > { %p212_p1 = scmp.lt.s32.totalorder %s1148_s21, 3 }
   0x4   : > { %p213_p2 = pnand %p1038_p0, %p212_p1 }
   0x5   : > { %p242_p3 = scmp.lt.s32.totalorder (!%p213_p2), %s1034_s22, 1  ;;  %v262_v0 = vlaneseq (!%p213_p2)  ;;  %vm252_vm0 = vcmask (!%p213_p2), 134144   ;;  %v1150_v2 = vmov (!%p213_p2), 0.0   ;;  %vm254_vm1 = vcmask (!%p213_p2), 273544   ;;  %s1151_s7 = smov (!%p213_p2), 17   ;;  %v510_v63 = vld [vmem:[%s1435_s2] sm:$0xff] (!%p213_p2) }
   0x6   : > { %216 = sbr.rel (%p213_p2) target bundleno = 1033 (0x409), region = 44  ;;  %253 = vst.msk [vmem:[#allocation2] sm:$0xf] (!%p213_p2), %vm252_vm0, %v1150_v2  ;;  %vm256_vm2 = vcmask (!%p213_p2), 138240   ;;  %591 = vmatprep.mubr.f32.mxu0 (!%p213_p2), %v1150_v2  ;;  %946 = vmatprep.mubr.f32.mxu1 (!%p213_p2), %v1150_v2  ;;  %s1152_s8 = smov (!%p213_p2), 16   ;;  %vm291_vm3 = vcmask (!%p213_p2), 1043592  }
   0x7   : > { %v263_v1 = vshrl.u32 (!%p213_p2), %v262_v0, 7  ;;  %v260_v3 = vld [vmem:[%s1438_s5] ss:$4 sm:$0x3] (!%p213_p2)  ;;  %255 = vst.msk [vmem:[#allocation2 + $0x8] sm:$0xf] (!%p213_p2), %vm254_vm1, %v1150_v2 }
   0x8   : > { %v1043_v4 = vld [vmem:[%s1438_s5 + $0x2] ss:$4 sm:$0x3] (!%p213_p2)  ;;  %257 = vst.msk [vmem:[#allocation3] sm:$0xff] (!%p213_p2), %vm256_vm2, %v1150_v2  ;;  %s1153_s9 = smov (!%p213_p2), 2   ;;  %s1154_s10 = smov (!%p213_p2), 32  }
   0x9   : > { %v264_v5 = vsub.s32 (!%p213_p2), 0, %v263_v1  ;;  %v268_v6 = vsub.s32 (!%p213_p2), 1, %v263_v1  ;;  %s1155_s11 = smov (!%p213_p2), 18   ;;  %s1156_s12 = smov (!%p213_p2), 34   ;;  %vm292_vm4 = vcmask (!%p213_p2), 1047556   ;;  %vm330_vm6 = vcmask (!%p213_p2), 15360  }
   0xa   : > { %vm293_vm5 = vmor (!%p213_p2), %vm292_vm4, %vm291_vm3  ;;  %s1157_s13 = smov (!%p213_p2), 95   ;;  %s1158_s14 = smov (!%p213_p2), 111   ;;  %vm357_vm7 = vcmask (!%p213_p2), 130048   ;;  %vm403_vm8 = vcmask (!%p213_p2), 146432   ;;  %vm431_vm9 = vcmask (!%p213_p2), 261120   ;;  %vm477_vm10 = vcmask (!%p213_p2), 277504  }
   0xb   : > { %v1228_v8 = vrot.slane (!%p213_p2), %v260_v3, %v264_v5  ;;  %v1230_v9 = vrot.slane (!%p213_p2), %v260_v3, %v268_v6  ;;  %v1232_v10 = vrot.slane (!%p213_p2), %v1043_v4, %v264_v5  ;;  %v1234_v11 = vrot.slane (!%p213_p2), %v1043_v4, %v268_v6  ;;  %s1159_s15 = smov (!%p213_p2), 127   ;;  %s1160_s16 = smov (!%p213_p2), 96  }
   0xc   : > { %s1161_s17 = smov (!%p213_p2), 126   ;;  %s1162_s18 = smov (!%p213_p2), 112   ;;  %v1165_v62 = vmov (!%p213_p2), 0   ;;  %vm317_vm11 = vcmask (!%p213_p2), 1039360   ;;  %vm1442_vm12 = vcmask (!%p213_p2), 777216   ;;  %vm391_vm13 = vcmask (!%p213_p2), 908288  }
   0xd   : > { %s1450_s22 = smov (!%p242_p3, %s1034_s22), 1  ;;  %v297_v12 = vcombine.low %v1228_v8, %v1230_v9  ;;  %v326_v13 = vcombine.low %v1232_v10, %v1234_v11  ;;  %s1163_s19 = smov 110   ;;  %1139 = vset.pattern.permute.xlu1 %v1165_v62  ;;  %1103 = vset.pattern.permute.xlu0 %v1165_v62  ;;  %vm419_vm14 = vcmask 900096   ;;  %vm345_vm15 = vcmask 1031168  }
   0xe   : > { %s1053_s27 = sshll.u32 %s1450_s22, 3  ;;  %s1164_s20 = smov 94   ;;  %vm1441_vm1 = vcmask 785408   ;;  %vm1440_vm3 = vcmask 769024   ;;  %vm520_vm4 = vcmask 1043456  }
   0xf   : > { %s246_s30 = scalar_lea.vmem %s1433_s0, %s1053_s27  ;;  %354 = vrot.lane.b32.xlu1 %v297_v12, %s1152_s8 }
  0x10   : > { %v283_v7 = vld [vmem:[%s246_s30] sm:$0xff] }
  0x11   : > { %285 = vrot.lane.b32.xlu0 %v283_v7, %s1151_s7 }
  0x13   : > { %428 = vrot.lane.b32.xlu1 %v297_v12, %s1154_s10 }
  0x15   : > { %327 = vrot.lane.b32.xlu0 %v326_v13, %s1153_s9 }
  0x17   : > { %474 = vrot.lane.b32.xlu1 %v326_v13, %s1156_s12 }
  0x19   : > { %400 = vrot.lane.b32.xlu0 %v326_v13, %s1155_s11 }
  0x81   : > { %v355_v17 = vpop.permute.xlu1 %354 }
  0x82   : > { %v356_v30 = vrot.slane %v355_v17, 4 }
  0x83   : > { %v286_v14 = vpop.permute.xlu0 %285 }
  0x84   : > { %v287_v15 = vrot.slane %v286_v14, 4  ;;  %v358_v34 = vsel %vm357_vm7, %v356_v30, %v355_v17 }
  0x85   : > { %v429_v19 = vpop.permute.xlu1 %428 }
  0x86   : > { %v288_v16 = vsel %vm256_vm2, %v287_v15, %v286_v14  ;;  %295 = vst.msk [vmem:[#allocation2 + $0x8] sm:$0xf] %vm252_vm0, %v287_v15  ;;  %v430_v21 = vrot.slane %v429_v19, 4  ;;  %vm373_vm0 = vcmask 916480  }
  0x87   : > { %294 = vst.msk [vmem:[#allocation2] sm:$0xff] %vm293_vm5, %v288_v16  ;;  %v328_v24 = vpop.permute.xlu0 %327  ;;  %vm516_vm5 = vcmask 293888  }
  0x88   : > { %v329_v25 = vrot.slane %v328_v24, 4  ;;  %v432_v46 = vsel %vm431_vm9, %v430_v21, %v429_v19 }
  0x89   : > { %v475_v48 = vpop.permute.xlu1 %474 }
  0x8a   : > { %v331_v32 = vsel %vm330_vm6, %v329_v25, %v328_v24  ;;  %v476_v51 = vrot.slane %v475_v48, 4 }
  0x8b   : > { %v401_v35 = vpop.permute.xlu0 %400 }
  0x8c   : > { %v402_v38 = vrot.slane %v401_v35, 4  ;;  %v478_v54 = vsel %vm477_vm10, %v476_v51, %v475_v48 }
  0x8d   : > { %v381_v20 = vld [vmem:[#allocation2 + $0x8] sm:$0xf] }
  0x8e   : > { %v1248_v18 = vld [vmem:[#allocation2] sm:$0xff]  ;;  %389 = vrot.lane.b32.xlu0 %v381_v20, %s1158_s14  ;;  %v427_v22 = vld [vmem:[#allocation2 + $0x8] sm:$0xf]  ;;  %v404_v41 = vsel %vm403_vm8, %v402_v38, %v401_v35 }
  0x8f   : > { %461 = vrot.lane.b32.xlu1 %v1248_v18, %s1157_s13  ;;  %v299_v23 = vmul.f32 %v297_v12, %v1248_v18  ;;  %v1140_v26 = vld [vmem:[#allocation2 + $0x8] ss:$0 sps:$4 sm:$0xff]   ;;  %v436_v29 = vmul.f32 %v430_v21, %v427_v22  ;;  %v334_v36 = vmul.f32 %v331_v32, %v1248_v18  ;;  %v361_v37 = vmul.f32 %v358_v34, %v1248_v18 }
  0x90   : > { %v325_v28 = vld [vmem:[#allocation2 + $0x8] sm:$0xf]  ;;  %v384_v40 = vcombine.high %v1248_v18, %v1248_v18  ;;  %v457_v43 = vcombine.low %v1248_v18, %v1248_v18  ;;  %v407_v44 = vmul.f32 %v404_v41, %v1248_v18  ;;  %v435_v50 = vmul.f32 %v432_v46, %v1248_v18 }
  0x91   : > { %v301_v27 = vcombine.high %v299_v23, %v299_v23  ;;  %303 = vst [vmem:[#allocation4] sm:$0xf] %v299_v23  ;;  %v335_v31 = vmul.f32 %v329_v25, %v325_v28  ;;  %v1141_v33 = vld [vmem:[#allocation2 + $0x8] ss:$0 sps:$4 sm:$0xff]   ;;  %v338_v52 = vcombine.high %v334_v36, %v334_v36  ;;  %v365_v55 = vcombine.low %v361_v37, %v361_v37 }
  0x92   : > { %313 = vrot.lane.b32.xlu0 %v1248_v18, %s1159_s15  ;;  %v399_v39 = vld [vmem:[#allocation2 + $0x8] sm:$0xf]  ;;  %v481_v56 = vmul.f32 %v478_v54, %v1248_v18  ;;  %v439_v57 = vcombine.high %v435_v50, %v435_v50  ;;  %v411_v58 = vcombine.low %v407_v44, %v407_v44 }
  0x93   : > { %385 = vrot.lane.b32.xlu1 %v1248_v18, %s1158_s14  ;;  %304 = vst [vmem:[#allocation4 + $0x8] sm:$0xf] %v301_v27  ;;  %v408_v42 = vmul.f32 %v402_v38, %v399_v39  ;;  %v353_v45 = vld [vmem:[#allocation2 + $0x8] sm:$0xf] }
  0x94   : > { %v362_v49 = vmul.f32 %v356_v30, %v353_v45  ;;  %v485_v59 = vcombine.high %v481_v56, %v481_v56  ;;  %v473_v60 = vld [vmem:[#allocation2 + $0x8] sm:$0xf] }
  0x95   : > { %v412_v47 = vcombine.low %v408_v42, %v408_v42  ;;  %v482_v61 = vmul.f32 %v476_v51, %v473_v60 }
  0x96   : > { %444 = vrot.lane.b32.xlu0 %v436_v29, %s1160_s16  ;;  %v366_v53 = vcombine.low %v362_v49, %v362_v49 }
  0x97   : > { %315 = vrot.lane.b32.xlu1 %v1140_v26, %s1159_s15 }
  0x9a   : > { %463 = vrot.lane.b32.xlu0 %v1141_v33, %s1157_s13 }
  0x9b   : > { %343 = vrot.lane.b32.xlu1 %v335_v31, %s1161_s17 }
  0x9e   : > { %369 = vrot.lane.b32.xlu0 %v361_v37, %s1162_s18 }
  0x9f   : > { %339 = vrot.lane.b32.xlu1 %v334_v36, %s1161_s17 }
  0xa2   : > { %311 = vrot.lane.b32.xlu0 %v457_v43, %s1159_s15 }
  0xa3   : > { %387 = vrot.lane.b32.xlu1 %v384_v40, %s1158_s14 }
  0xa6   : > { %417 = vrot.lane.b32.xlu0 %v412_v47, %s1163_s19 }
  0xa7   : > { %415 = vrot.lane.b32.xlu1 %v407_v44, %s1163_s19 }
  0xaa   : > { %341 = vrot.lane.b32.xlu0 %v338_v52, %s1161_s17 }
  0xab   : > { %440 = vrot.lane.b32.xlu1 %v435_v50, %s1160_s16 }
  0xae   : > { %367 = vrot.lane.b32.xlu0 %v365_v55, %s1162_s18 }
  0xaf   : > { %371 = vrot.lane.b32.xlu1 %v366_v53, %s1162_s18 }
  0xb2   : > { %413 = vrot.lane.b32.xlu0 %v411_v58, %s1163_s19  ;;  %v499_v58 = vld [vmem:[%s1434_s1] sm:$0xff] }
  0xb3   : > { %442 = vrot.lane.b32.xlu1 %v439_v57, %s1160_s16 }
  0xb6   : > { %459 = vrot.lane.b32.xlu0 %v457_v43, %s1157_s13 }
  0xb7   : > { %488 = vrot.lane.b32.xlu1 %v485_v59, %s1164_s20 }
  0xba   : > { %490 = vrot.lane.b32.xlu0 %v482_v61, %s1164_s20 }
  0xbb   : > { %486 = vrot.lane.b32.xlu1 %v481_v56, %s1164_s20 }
  0xbe   : > { %513 = vperm.xlu0 %1103, %v510_v63  }
  0xc2   : > { %645 = vrot.lane.b32.xlu0 %v1232_v10, %s1153_s9 }
  0xc6   : > { %674 = vrot.lane.b32.xlu0 %v1228_v8, %s1152_s8 }
  0xca   : > { %721 = vrot.lane.b32.xlu0 %v1232_v10, %s1155_s11 }
  0xce   : > { %750 = vrot.lane.b32.xlu0 %v1228_v8, %s1154_s10 }
  0xd2   : > { %797 = vrot.lane.b32.xlu0 %v1232_v10, %s1156_s12 }
 0x100   : > { %v390_v1 = vpop.permute.xlu0 %389 }
 0x101   : > { %v462_v0 = vpop.permute.xlu1 %461 }
 0x104   : > { %v314_v4 = vpop.permute.xlu0 %313 }
 0x105   : > { %v386_v3 = vpop.permute.xlu1 %385 }
 0x108   : > { %v445_v6 = vpop.permute.xlu0 %444 }
 0x109   : > { %v316_v5 = vpop.permute.xlu1 %315 }
 0x10a   : > { %v319_v7 = vsel %vm317_vm11, %v314_v4, %v316_v5 }
 0x10b   : > { %323 = vst [vmem:[#allocation4 + $0x8] sm:$0xf0] %v319_v7 }
 0x10c   : > { %v464_v13 = vpop.permute.xlu0 %463 }
 0x10d   : > { %v344_v12 = vpop.permute.xlu1 %343  ;;  %v467_v14 = vsel %vm1442_vm12, %v462_v0, %v464_v13 }
 0x10e   : > { %471 = vst [vmem:[#allocation4 + $0x38] sm:$0xf0] %v467_v14 }
 0x110   : > { %v370_v16 = vpop.permute.xlu0 %369 }
 0x111   : > { %v340_v15 = vpop.permute.xlu1 %339 }
 0x112   : > { %v501_v39 = vld [vmem:[#allocation4 + $0x8] sm:$0xff] }
 0x114   : > { %v312_v17 = vpop.permute.xlu0 %311 }
 0x115   : > { %v388_v10 = vpop.permute.xlu1 %387  ;;  %v318_v20 = vsel %vm317_vm11, %v312_v17, %v314_v4 }
 0x116   : > { %v392_v18 = vsel %vm391_vm13, %v386_v3, %v388_v10  ;;  %v393_v19 = vsel %vm391_vm13, %v388_v10, %v390_v1  ;;  %322 = vst [vmem:[#allocation4] sm:$0xf0] %v318_v20 }
 0x117   : > { %396 = vst [vmem:[#allocation4 + $0x20] sm:$0xf] %v392_v18  ;;  %397 = vst [vmem:[#allocation4 + $0x28] sm:$0xf] %v393_v19 }
 0x118   : > { %v418_v22 = vpop.permute.xlu0 %417 }
 0x119   : > { %v416_v21 = vpop.permute.xlu1 %415 }
 0x11a   : > { %v421_v23 = vsel %vm419_vm14, %v416_v21, %v418_v22 }
 0x11b   : > { %425 = vst [vmem:[#allocation4 + $0x28] sm:$0xf0] %v421_v23 }
 0x11c   : > { %v342_v25 = vpop.permute.xlu0 %341 }
 0x11d   : > { %v441_v24 = vpop.permute.xlu1 %440  ;;  %v346_v26 = vsel %vm345_vm15, %v340_v15, %v342_v25  ;;  %v347_v27 = vsel %vm345_vm15, %v342_v25, %v344_v12  ;;  %v500_v43 = vld [vmem:[#allocation4] sm:$0xff] }
 0x11e   : > { %350 = vst [vmem:[#allocation4 + $0x10] sm:$0xf] %v346_v26  ;;  %351 = vst [vmem:[#allocation4 + $0x18] sm:$0xf] %v347_v27 }
 0x120   : > { %v368_v29 = vpop.permute.xlu0 %367 }
 0x121   : > { %v372_v28 = vpop.permute.xlu1 %371  ;;  %v374_v31 = vsel %vm373_vm0, %v368_v29, %v370_v16 }
 0x122   : > { %v375_v30 = vsel %vm373_vm0, %v370_v16, %v372_v28  ;;  %378 = vst [vmem:[#allocation4 + $0x10] sm:$0xf0] %v374_v31  ;;  %v505_v49 = vld [vmem:[#allocation4 + $0x28] sm:$0xff] }
 0x123   : > { %379 = vst [vmem:[#allocation4 + $0x18] sm:$0xf0] %v375_v30 }
 0x124   : > { %v414_v33 = vpop.permute.xlu0 %413 }
 0x125   : > { %v443_v32 = vpop.permute.xlu1 %442  ;;  %v420_v36 = vsel %vm419_vm14, %v414_v33, %v416_v21 }
 0x126   : > { %v447_v34 = vsel %vm1441_vm1, %v441_v24, %v443_v32  ;;  %v448_v35 = vsel %vm1441_vm1, %v443_v32, %v445_v6  ;;  %424 = vst [vmem:[#allocation4 + $0x20] sm:$0xf0] %v420_v36 }
 0x127   : > { %451 = vst [vmem:[#allocation4 + $0x30] sm:$0xf] %v447_v34  ;;  %452 = vst [vmem:[#allocation4 + $0x38] sm:$0xf] %v448_v35 }
 0x128   : > { %v460_v38 = vpop.permute.xlu0 %459 }
 0x129   : > { %v489_v37 = vpop.permute.xlu1 %488  ;;  %v466_v41 = vsel %vm1442_vm12, %v460_v38, %v462_v0  ;;  %v502_v44 = vld [vmem:[#allocation4 + $0x10] sm:$0xff] }
 0x12a   : > { %v503_v40 = vld [vmem:[#allocation4 + $0x18] sm:$0xff]  ;;  %470 = vst [vmem:[#allocation4 + $0x30] sm:$0xf0] %v466_v41  ;;  %v1057_v45 = vpack.c.bf16 %v502_v44, %v500_v43 }
 0x12b   : > { %v1055_v42 = vpack.c.bf16 %v503_v40, %v501_v39 }
 0x12c   : > { %v491_v47 = vpop.permute.xlu0 %490 }
 0x12d   : > { %v487_v46 = vpop.permute.xlu1 %486  ;;  %1056 = vmatprep.subr.bf16.mxu0 %v1055_v42  ;;  %v494_v51 = vsel %vm1440_vm3, %v489_v37, %v491_v47  ;;  %v504_v53 = vld [vmem:[#allocation4 + $0x20] sm:$0xff] }
 0x12e   : > { %v493_v48 = vsel %vm1440_vm3, %v487_v46, %v489_v37  ;;  %1058 = vmatpush1.bf16.msra.mxu0 %v1057_v45  ;;  %v507_v50 = vld [vmem:[#allocation4 + $0x38] sm:$0xff]  ;;  %498 = vst [vmem:[#allocation4 + $0x48] sm:$0xf] %v494_v51  ;;  %vm258_vm3 = vcmask 277640   ;;  %v846_v47 = vld [vmem:[%s1437_s4 + $0x8] sm:$0xff] }
 0x12f   : > { %497 = vst [vmem:[#allocation4 + $0x40] sm:$0xf] %v493_v48  ;;  %v1059_v52 = vpack.c.bf16 %v507_v50, %v505_v49  ;;  %259 = vst.msk [vmem:[#allocation3 + $0x10] sm:$0xff] %vm258_vm3, %v1150_v2  ;;  %v848_v48 = vld [vmem:[%s1437_s4 + $0x18] sm:$0xff]  ;;  %v845_v49 = vld [vmem:[%s1437_s4] sm:$0xff] }
 0x130   : > { %v847_v50 = vld [vmem:[%s1437_s4 + $0x10] sm:$0xff] }
 0x131   : > { %1060 = vmatprep.subr.bf16.mxu0 %v1059_v52  ;;  %v506_v54 = vld [vmem:[#allocation4 + $0x30] sm:$0xff] }
 0x132   : > { %v1061_v55 = vpack.c.bf16 %v506_v54, %v504_v53 }
 0x134   : > { %1062 = vmatpush1.bf16.msra.mxu0 %v1061_v55 }
 0x135   : > { %v509_v56 = vld [vmem:[#allocation4 + $0x48] sm:$0xf] }
 0x136   : > { %v508_v57 = vld [vmem:[#allocation4 + $0x40] sm:$0xf]  ;;  %1044 = vmatprep.subr.msk.mxu0 %vm520_vm4, %v509_v56 }
 0x138   : > { %1045 = vmatpush1.msk.msra.mxu0 %vm520_vm4, %v508_v57 }
 0x139   : > { %1046 = vmatmul.mubr.msk.f32.vlgmr.msra.gmra.mrb[0].mxu0 %vm516_vm5, %v499_v58 }
 0x13d   : > { %v514_v59 = vpop.permute.xlu0 %513 }
 0x141   : > { %v646_v6 = vpop.permute.xlu0 %645 }
 0x145   : > { %v675_v15 = vpop.permute.xlu0 %674 }
 0x149   : > { %v722_v19 = vpop.permute.xlu0 %721 }
 0x14d   : > { %v751_v34 = vpop.permute.xlu0 %750 }
 0x151   : > { %v798_v41 = vpop.permute.xlu0 %797 }
 0x20c   : > { %v593_v60 = vpop.f32.mrb[0].mxu0 }
 0x20d   : > { %v594_v61 = vadd.f32 %v593_v60, %v514_v59  ;;  %v595_v62 = vpop.f32.mrb[1].mxu0 }
 0x20e   : > { %v596_v63 = vadd.f32 %v595_v62, %v514_v59 }
 0x20f   : > { %vm598_vm1 = vcmp.ge.f32.partialorder %v594_v61, 0.0  ;;  %v600_v0 = vmul.f32 0.01, %v594_v61 }
 0x210   : > { %v601_v1 = vmul.f32 0.01, %v596_v63  ;;  %vm599_vm12 = vcmp.ge.f32.partialorder %v596_v63, 0.0 }
 0x211   : > { %v602_v3 = vsel %vm598_vm1, %v594_v61, %v600_v0  ;;  %vm614_vm1 = vcmask 1047688  }
 0x212   : > { %606 = vrot.lane.b32.xlu1 %v602_v3, %s1151_s7  ;;  %v603_v4 = vsel %vm599_vm12, %v596_v63, %v601_v1 }
 0x216   : > { %608 = vrot.lane.b32.xlu1 %v603_v4, %s1151_s7 }
 0x21a   : > { %647 = vrot.lane.b32.xlu1 %v1234_v11, %s1153_s9 }
 0x21e   : > { %676 = vrot.lane.b32.xlu1 %v1230_v9, %s1152_s8 }
 0x222   : > { %723 = vrot.lane.b32.xlu1 %v1234_v11, %s1155_s11 }
 0x226   : > { %752 = vrot.lane.b32.xlu1 %v1230_v9, %s1154_s10 }
 0x22a   : > { %799 = vrot.lane.b32.xlu1 %v1234_v11, %s1156_s12 }
 0x284   : > { %v607_v5 = vpop.permute.xlu1 %606 }
 0x285   : > { %615 = vst.msk [vmem:[#allocation3] sm:$0xff] %vm614_vm1, %v607_v5 }
 0x288   : > { %v609_v7 = vpop.permute.xlu1 %608 }
 0x289   : > { %v1338_v12 = vsel %vm256_vm2, %v607_v5, %v609_v7  ;;  %617 = vst.msk [vmem:[#allocation3 + $0x10] sm:$0xff] %vm256_vm2, %v609_v7  ;;  %vm1443_vm2 = vcmask 777216  }
 0x28a   : > { %v621_v57 = vmul.f32 %v1338_v12, %v1230_v9 }
 0x28c   : > { %v1341_v13 = vld [vmem:[#allocation3] sm:$0xff]  ;;  %v648_v14 = vpop.permute.xlu1 %647 }
 0x28d   : > { %706 = vrot.lane.b32.xlu0 %v1341_v13, %s1158_s14  ;;  %630 = vrot.lane.b32.xlu1 %v1341_v13, %s1159_s15  ;;  %v682_v10 = vmul.f32 %v1341_v13, %v675_v15  ;;  %v729_v20 = vmul.f32 %v722_v19, %v1341_v13  ;;  %v653_v25 = vmul.f32 %v1341_v13, %v646_v6 }
 0x28e   : > { %v649_v26 = vsel %vm330_vm6, %v646_v6, %v648_v14  ;;  %v758_v37 = vmul.f32 %v751_v34, %v1341_v13  ;;  %v805_v46 = vmul.f32 %v798_v41, %v1341_v13  ;;  %v620_v58 = vmul.f32 %v1341_v13, %v1228_v8 }
 0x28f   : > { %v654_v31 = vmul.f32 %v649_v26, %v1338_v12  ;;  %vm1444_vm6 = vcmask 785408  }
 0x290   : > { %v644_v11 = vld [vmem:[#allocation3 + $0x10] sm:$0xff]  ;;  %v677_v16 = vpop.permute.xlu1 %676 }
 0x291   : > { %v678_v17 = vsel %vm357_vm7, %v675_v15, %v677_v16  ;;  %v1104_v18 = vpack.i.bf16 %v644_v11, %v1338_v12  ;;  %688 = vrot.lane.b32.xlu1 %v682_v10, %s1162_s18  ;;  %v684_v22 = vmul.f32 %v677_v16, %v644_v11  ;;  %v655_v30 = vmul.f32 %v648_v14, %v644_v11  ;;  %vm1445_vm7 = vmmov %vm1443_vm2 }
 0x292   : > { %v683_v21 = vmul.f32 %v678_v17, %v1338_v12 }
 0x293   : > { %1105 = vrot.lane.b32.xlu0 %v1104_v18, %s1159_s15  ;;  %v1114_v35 = vpack.i.bf16 %v655_v30, %v654_v31 }
 0x294   : > { %v724_v23 = vpop.permute.xlu1 %723  ;;  %v1119_v27 = vpack.i.bf16 %v684_v22, %v683_v21 }
 0x295   : > { %v725_v24 = vsel %vm403_vm8, %v722_v19, %v724_v23  ;;  %735 = vrot.lane.b32.xlu1 %v729_v20, %s1163_s19  ;;  %v731_v29 = vmul.f32 %v724_v23, %v644_v11  ;;  %vm1446_vm8 = vmmov %vm1444_vm6 }
 0x296   : > { %v730_v28 = vmul.f32 %v725_v24, %v1338_v12 }
 0x297   : > { %659 = vrot.lane.b32.xlu0 %v653_v25, %s1161_s17 }
 0x298   : > { %v753_v32 = vpop.permute.xlu1 %752  ;;  %v1124_v33 = vpack.i.bf16 %v731_v29, %v730_v28 }
 0x299   : > { %1120 = vrot.lane.b32.xlu1 %v1119_v27, %s1162_s18  ;;  %v754_v36 = vsel %vm431_vm9, %v751_v34, %v753_v32  ;;  %v760_v39 = vmul.f32 %v753_v32, %v644_v11  ;;  %vm1447_vm9 = vcmask 769024  }
 0x29a   : > { %v759_v38 = vmul.f32 %v754_v36, %v1338_v12 }
 0x29b   : > { %1110 = vrot.lane.b32.xlu0 %v1104_v18, %s1158_s14 }
 0x29c   : > { %v800_v40 = vpop.permute.xlu1 %799  ;;  %v1134_v42 = vpack.i.bf16 %v760_v39, %v759_v38 }
 0x29d   : > { %1125 = vrot.lane.b32.xlu1 %v1124_v33, %s1163_s19  ;;  %v801_v43 = vsel %vm477_vm10, %v798_v41, %v800_v40  ;;  %v807_v44 = vmul.f32 %v800_v40, %v644_v11  ;;  %vm1448_vm10 = vmmov %vm1447_vm9  ;;  %s1054_s19 = sshll.u32 %s1450_s22, 6 }
 0x29e   : > { %v806_v45 = vmul.f32 %v801_v43, %v1338_v12  ;;  %s251_s24 = scalar_lea.vmem %s1439_s6, %s1054_s19 }
 0x29f   : > { %1115 = vrot.lane.b32.xlu0 %v1114_v35, %s1161_s17 }
 0x2a1   : > { %1130 = vrot.lane.b32.xlu1 %v1104_v18, %s1157_s13 }
 0x2a3   : > { %764 = vrot.lane.b32.xlu0 %v758_v37, %s1160_s16 }
 0x2a5   : > { %782 = vrot.lane.b32.xlu1 %v1341_v13, %s1157_s13 }
 0x2a7   : > { %1135 = vrot.lane.b32.xlu0 %v1134_v42, %s1160_s16 }
 0x2a9   : > { %815 = vrot.lane.b32.xlu1 %v807_v44, %s1164_s20 }
 0x2ab   : > { %813 = vrot.lane.b32.xlu0 %v806_v45, %s1164_s20  ;;  %v823_v45 = vld [vmem:[%s1436_s3] sm:$0xff] }
 0x2ad   : > { %851 = vperm.xlu1 %1139, %v845_v49  }
 0x2af   : > { %811 = vrot.lane.b32.xlu0 %v805_v46, %s1164_s20  ;;  %v824_v46 = vld [vmem:[%s1436_s3 + $0x8] sm:$0xff] }
 0x2b1   : > { %861 = vperm.xlu1 %1139, %v847_v50  }
 0x2b3   : > { %856 = vperm.xlu0 %1103, %v846_v47   ;;  %v825_v47 = vld [vmem:[%s1436_s3 + $0x10] sm:$0xff] }
 0x2b7   : > { %866 = vperm.xlu0 %1103, %v848_v48   ;;  %v826_v48 = vld [vmem:[%s1436_s3 + $0x18] sm:$0xff] }
 0x2ff   : > { %v631_v51 = vpop.permute.xlu1 %630  ;;  %v707_v52 = vpop.permute.xlu0 %706 }
 0x303   : > { %v689_v53 = vpop.permute.xlu1 %688 }
 0x305   : > { %v1106_v54 = vpop.permute.xlu0 %1105 }
 0x306   : > { %v1108_v55 = vunpack.i.h.bf16 %v1106_v54  ;;  %v1107_v56 = vunpack.i.l.bf16 %v1106_v54 }
 0x307   : > { %v736_v59 = vpop.permute.xlu1 %735 }
 0x308   : > { %v637_v60 = vsel %vm317_vm11, %v1107_v56, %v1108_v55  ;;  %v636_v61 = vsel %vm317_vm11, %v631_v51, %v1107_v56  ;;  %vm869_vm11 = vcmask 588800  }
 0x309   : > { %v660_v62 = vpop.permute.xlu0 %659  ;;  %v1063_v63 = vpack.c.bf16 %v637_v60, %v621_v57  ;;  %v1065_v0 = vpack.c.bf16 %v636_v61, %v620_v58 }
 0x30b   : > { %1064 = vmatprep.subr.bf16.mxu1 %v1063_v63  ;;  %v1121_v1 = vpop.permute.xlu1 %1120 }
 0x30c   : > { %1066 = vmatpush1.bf16.msra.mxu1 %v1065_v0  ;;  %v1123_v4 = vunpack.i.h.bf16 %v1121_v1  ;;  %v1122_v5 = vunpack.i.l.bf16 %v1121_v1 }
 0x30d   : > { %v1111_v3 = vpop.permute.xlu0 %1110 }
 0x30e   : > { %v1113_v14 = vunpack.i.h.bf16 %v1111_v3  ;;  %v1112_v8 = vunpack.i.l.bf16 %v1111_v3  ;;  %v695_v11 = vsel %vm373_vm0, %v1122_v5, %v1123_v4  ;;  %v694_v18 = vsel %vm373_vm0, %v689_v53, %v1122_v5 }
 0x30f   : > { %v1126_v6 = vpop.permute.xlu1 %1125 }
 0x310   : > { %v1128_v7 = vunpack.i.h.bf16 %v1126_v6  ;;  %v1127_v9 = vunpack.i.l.bf16 %v1126_v6  ;;  %v713_v23 = vsel %vm391_vm13, %v1112_v8, %v1113_v14  ;;  %v712_v30 = vsel %vm391_vm13, %v707_v52, %v1112_v8 }
 0x311   : > { %v1116_v12 = vpop.permute.xlu0 %1115 }
 0x312   : > { %v1118_v13 = vunpack.i.h.bf16 %v1116_v12  ;;  %v1117_v15 = vunpack.i.l.bf16 %v1116_v12  ;;  %v742_v19 = vsel %vm419_vm14, %v1127_v9, %v1128_v7  ;;  %v741_v25 = vsel %vm419_vm14, %v736_v59, %v1127_v9 }
 0x313   : > { %v1131_v16 = vpop.permute.xlu1 %1130  ;;  %v1071_v24 = vpack.c.bf16 %v742_v19, %v713_v23  ;;  %v1073_v33 = vpack.c.bf16 %v741_v25, %v712_v30 }
 0x314   : > { %v666_v10 = vsel %vm345_vm15, %v1117_v15, %v1118_v13  ;;  %v665_v17 = vsel %vm345_vm15, %v660_v62, %v1117_v15  ;;  %v1133_v26 = vunpack.i.h.bf16 %v1131_v16  ;;  %v1132_v27 = vunpack.i.l.bf16 %v1131_v16 }
 0x315   : > { %v765_v20 = vpop.permute.xlu0 %764  ;;  %v1067_v21 = vpack.c.bf16 %v695_v11, %v666_v10  ;;  %v1069_v22 = vpack.c.bf16 %v694_v18, %v665_v17 }
 0x316   : > { %v789_v36 = vsel %vm1445_vm7, %v1132_v27, %v1133_v26 }
 0x317   : > { %1068 = vmatprep.subr.bf16.mxu1 %v1067_v21  ;;  %v783_v28 = vpop.permute.xlu1 %782 }
 0x318   : > { %1070 = vmatpush1.bf16.msra.mxu1 %v1069_v22  ;;  %v788_v34 = vsel %vm1443_vm2, %v783_v28, %v1132_v27 }
 0x319   : > { %v1136_v29 = vpop.permute.xlu0 %1135  ;;  %1072 = vmatprep.subr.bf16.mxu1 %v1071_v24 }
 0x31a   : > { %v1138_v31 = vunpack.i.h.bf16 %v1136_v29  ;;  %v1137_v32 = vunpack.i.l.bf16 %v1136_v29 }
 0x31b   : > { %v816_v41 = vpop.permute.xlu1 %815 }
 0x31c   : > { %1074 = vmatpush1.bf16.msra.mxu1 %v1073_v33  ;;  %v771_v35 = vsel %vm1444_vm6, %v1137_v32, %v1138_v31  ;;  %v770_v37 = vsel %vm1446_vm8, %v765_v20, %v1137_v32 }
 0x31d   : > { %v814_v38 = vpop.permute.xlu0 %813  ;;  %v1075_v39 = vpack.c.bf16 %v789_v36, %v771_v35  ;;  %v1077_v40 = vpack.c.bf16 %v788_v34, %v770_v37 }
 0x31e   : > { %v818_v42 = vsel %vm1447_vm9, %v814_v38, %v816_v41 }
 0x31f   : > { %1076 = vmatprep.subr.bf16.mxu1 %v1075_v39 }
 0x320   : > { %1078 = vmatpush1.bf16.msra.mxu1 %v1077_v40 }
 0x321   : > { %v812_v43 = vpop.permute.xlu0 %811  ;;  %898 = vmatprep.subr.mxu1 %v818_v42 }
 0x322   : > { %v817_v44 = vsel %vm1448_vm10, %v812_v43, %v814_v38 }
 0x324   : > { %899 = vmatpush1.msra.mxu1 %v817_v44 }
 0x325   : > { %1047 = vmatmul.mubr.msk.f32.vlgmr.msra.gmra.mrb[0].mxu1 %vm869_vm11, %v823_v45 }
 0x326   : > { %952 = vmatprep.mubr.f32.mxu1 %v1150_v2 }
 0x329   : > { %1048 = vmatmul.mubr.msk.f32.gmra.mrb[2].mxu1 %vm869_vm11, %v824_v46 }
 0x32a   : > { %958 = vmatprep.mubr.f32.mxu1 %v1150_v2 }
 0x32c   : > { %v852_v49 = vpop.permute.xlu1 %851 }
 0x32d   : > { %1049 = vmatmul.mubr.msk.f32.gmra.mrb[4].mxu1 %vm869_vm11, %v825_v47 }
 0x32e   : > { %964 = vmatprep.mubr.f32.mxu1 %v1150_v2 }
 0x330   : > { %v862_v58 = vpop.permute.xlu1 %861 }
 0x331   : > { %1050 = vmatmul.mubr.msk.f32.gmra.mrb[6].mxu1 %vm869_vm11, %v826_v48 }
 0x332   : > { %v857_v54 = vpop.permute.xlu0 %856 }
 0x336   : > { %v867_v63 = vpop.permute.xlu0 %866 }
 0x3f8   : > { %v948_v50 = vpop.f32.mrb[0].mxu1 }
 0x3f9   : > { %v949_v51 = vadd.f32 %v948_v50, %v852_v49  ;;  %v950_v52 = vpop.f32.mrb[1].mxu1 }
 0x3fa   : > { %v951_v53 = vadd.f32 %v950_v52, %v852_v49 }
 0x3fb   : > { %971 = vst [vmem:[%s251_s24] sm:$0xff] %v949_v51 }
 0x3fc   : > { %972 = vst [vmem:[%s251_s24 + $0x8] sm:$0xff] %v951_v53  ;;  %v954_v55 = vpop.f32.mrb[2].mxu1 }
 0x3fd   : > { %v955_v2 = vadd.f32 %v954_v55, %v857_v54  ;;  %v956_v56 = vpop.f32.mrb[3].mxu1 }
 0x3fe   : > { %v957_v57 = vadd.f32 %v956_v56, %v857_v54 }
 0x3ff   : > { %973 = vst [vmem:[%s251_s24 + $0x10] sm:$0xff] %v955_v2 }
 0x400   : > { %974 = vst [vmem:[%s251_s24 + $0x18] sm:$0xff] %v957_v57  ;;  %v960_v59 = vpop.f32.mrb[4].mxu1 }
 0x401   : > { %v961_v60 = vadd.f32 %v960_v59, %v862_v58  ;;  %v962_v61 = vpop.f32.mrb[5].mxu1 }
 0x402   : > { %v963_v62 = vadd.f32 %v962_v61, %v862_v58 }
 0x403   : > { %975 = vst [vmem:[%s251_s24 + $0x20] sm:$0xff] %v961_v60 }
 0x404   : > { %976 = vst [vmem:[%s251_s24 + $0x28] sm:$0xff] %v963_v62  ;;  %v966_v0 = vpop.f32.mrb[6].mxu1 }
 0x405   : > { %v967_v1 = vadd.f32 %v966_v0, %v867_v63  ;;  %v968_v3 = vpop.f32.mrb[7].mxu1 }
 0x406   : > { %v969_v4 = vadd.f32 %v968_v3, %v867_v63 }
 0x407   : > { %977 = vst [vmem:[%s251_s24 + $0x30] sm:$0xff] %v967_v1 }
 0x408   : > { %978 = vst [vmem:[%s251_s24 + $0x38] sm:$0xff] %v969_v4 }
 0x409 PF: > { %s16_s21 = sadd.s32 1, %s1148_s21  }
 0x40a   : > { %p13_p4 = scmp.ge.s32.totalorder %s16_s21, 4  }
 0x40c   :  { %15 = sbr.rel (!%p13_p4) target bundleno = 1 (0x1), region = 75 }

</bundles_post_ra>
